<compile_context>
chip_gen: v7x
topology: tpu7x:2x2x1
jax: 0.10.0
libtpu: 0.0.40
codegen_flags: <defaults>
</compile_context>

<pallas_src>
import jax
import jax.numpy as jnp
from jax.experimental import pallas as pl
from jax.experimental.pallas import tpu as pltpu

_LANE = 128


def mlp_kernel(x_ref, w1_ref, b1_ref, w2_ref, b2_ref, o_ref):
    # x_ref : (TB, D_IN)      w1_ref: (D_IN, D_HP)   b1_ref: (1, D_HP)
    # w2_ref: (D_HP, D_OP)    b2_ref: (1, D_OP)      o_ref : (TB, D_OP)
    x = x_ref[...]
    # First matmul on the MXU, f32 accumulation.
    h = jnp.dot(x, w1_ref[...], preferred_element_type=jnp.float32)
    # Fused bias + ReLU on the f32 accumulator (f32 VPU math — required on v5e).
    h = jnp.maximum(h + b1_ref[...].astype(jnp.float32), 0.0)
    # Second matmul: feed the MXU in the weight dtype (bf16-native if bf16 params).
    y = jnp.dot(h.astype(w2_ref.dtype), w2_ref[...],
                preferred_element_type=jnp.float32)
    y = y + b2_ref[...].astype(jnp.float32)
    o_ref[...] = y.astype(o_ref.dtype)


def _round_up(n, m):
    return ((n + m - 1) // m) * m


def _default_batch_tile(B):
    # Largest 8-aligned tile that divides B and still leaves >=2 grid steps
    # (pipelining + v7x 2-TC sharding). Falls back to the full batch.
    for tb in (1024, 512, 256, 128, 64, 32, 16, 8):
        if B % tb == 0 and B // tb >= 2:
            return tb
    return B


def neuralnet_forward(x, w1, b1, w2, b2, *, batch_tile=None):
    """Fused MLP forward (Linear -> ReLU -> Linear) as one pallas_call.

    x : (B, d_in);  w1 : (d_in, d_h);  b1 : (d_h,);  w2 : (d_h, d_out);  b2 : (d_out,)
    Weights are stored as [in_features, out_features] (transposed from PyTorch).
    """
    B, d_in = x.shape
    d_in_w, d_h = w1.shape
    d_h_w, d_out = w2.shape
    assert d_in == d_in_w and d_h == d_h_w

    # --- lane-dense zero padding of hidden / output feature dims -------------
    d_hp = _round_up(d_h, _LANE)
    d_op = _round_up(d_out, _LANE)
    w1p = jnp.zeros((d_in, d_hp), w1.dtype).at[:, :d_h].set(w1)
    b1p = jnp.zeros((1, d_hp), b1.dtype).at[0, :d_h].set(b1.reshape(-1))
    w2p = jnp.zeros((d_hp, d_op), w2.dtype).at[:d_h, :d_out].set(w2)
    b2p = jnp.zeros((1, d_op), b2.dtype).at[0, :d_out].set(b2.reshape(-1))

    # --- batch tiling ---------------------------------------------------------
    tb = batch_tile or _default_batch_tile(B)
    assert B % tb == 0, f"batch {B} not divisible by tile {tb}"
    grid = (B // tb,)

    # --- scheduler hint -------------------------------------------------------
    itemsize = x.dtype.itemsize
    flops = 2 * B * (d_in * d_hp + d_hp * d_op)
    bytes_accessed = (
        B * d_in * itemsize                       # x
        + w1p.size * w1p.dtype.itemsize + b1p.size * b1p.dtype.itemsize
        + w2p.size * w2p.dtype.itemsize + b2p.size * b2p.dtype.itemsize
        + B * d_op * itemsize                     # y (padded)
    )

    y_pad = pl.pallas_call(
        mlp_kernel,
        out_shape=jax.ShapeDtypeStruct((B, d_op), x.dtype),
        grid_spec=pltpu.PrefetchScalarGridSpec(
            num_scalar_prefetch=0,
            grid=grid,
            in_specs=[
                pl.BlockSpec((tb, d_in), lambda i: (i, 0)),    # x: batch-tiled
                pl.BlockSpec((d_in, d_hp), lambda i: (0, 0)),  # W1: resident
                pl.BlockSpec((1, d_hp), lambda i: (0, 0)),     # b1
                pl.BlockSpec((d_hp, d_op), lambda i: (0, 0)),  # W2: resident
                pl.BlockSpec((1, d_op), lambda i: (0, 0)),     # b2
            ],
            out_specs=pl.BlockSpec((tb, d_op), lambda i: (i, 0)),  # lane-dense
        ),
        compiler_params=pltpu.CompilerParams(
            dimension_semantics=("parallel",)),
        cost_estimate=pl.CostEstimate(
            flops=flops, transcendentals=0, bytes_accessed=bytes_accessed),
    )(x, w1p, b1p, w2p, b2p)

    # Strip the lane padding to recover the module's true output width.
    return y_pad[:, :d_out]


def init_params(key, d_in, d_h, d_out, dtype=jnp.float32):
    """Deterministic PyTorch-Linear-style init (uniform(-1/sqrt(fan_in), +))."""
    k1, k2, k3, k4 = jax.random.split(key, 4)
    lim1 = 1.0 / (d_in ** 0.5)
    lim2 = 1.0 / (d_h ** 0.5)
    w1 = jax.random.uniform(k1, (d_in, d_h), dtype, -lim1, lim1)
    b1 = jax.random.uniform(k2, (d_h,), dtype, -lim1, lim1)
    w2 = jax.random.uniform(k3, (d_h, d_out), dtype, -lim2, lim2)
    b2 = jax.random.uniform(k4, (d_out,), dtype, -lim2, lim2)
    return w1, b1, w2, b2


if __name__ == "__main__":
    # Small but multi-tile shapes: grid = (2,) so the pipeline (and, on v7x,
    # both TensorCores) is actually exercised.
    B, D_IN, D_H, D_OUT = 128, 32, 64, 16

    key = jax.random.PRNGKey(0)
    kx, kp = jax.random.split(key)
    x = jax.random.normal(kx, (B, D_IN), jnp.float32)
    w1, b1, w2, b2 = init_params(kp, D_IN, D_H, D_OUT)

    # Pure-JAX reference of the same forward pass.
    y_ref = jnp.maximum(x @ w1 + b1, 0.0) @ w2 + b2

    # f32 path (tight check).
    y = neuralnet_forward(x, w1, b1, w2, b2)
    jax.block_until_ready(y)
    assert y.shape == (B, D_OUT)
    assert jnp.allclose(y, y_ref, atol=1e-5, rtol=1e-5)

    # bf16 I/O path (mem-bound win; MXU-native inputs), f32 accumulation in-kernel.
    y_bf16 = neuralnet_forward(
        x.astype(jnp.bfloat16),
        w1.astype(jnp.bfloat16), b1.astype(jnp.bfloat16),
        w2.astype(jnp.bfloat16), b2.astype(jnp.bfloat16))
    jax.block_until_ready(y_bf16)
    assert y_bf16.shape == (B, D_OUT)
    assert jnp.allclose(y_bf16.astype(jnp.float32), y_ref, atol=5e-2, rtol=5e-2)

    print("KERNEL_OK")
</pallas_src>

<mosaic_0001>
module attributes {stable_mosaic.version = 11 : i64} {
  func.func @mlp_kernel(%arg0: i32, %arg1: memref<64x32xf32, #tpu.memory_space<vmem>>, %arg2: memref<32x128xf32, #tpu.memory_space<vmem>>, %arg3: memref<1x128xf32, #tpu.memory_space<vmem>>, %arg4: memref<128x128xf32, #tpu.memory_space<vmem>>, %arg5: memref<1x128xf32, #tpu.memory_space<vmem>>, %arg6: memref<64x128xf32, #tpu.memory_space<vmem>>) attributes {dimension_semantics = [#tpu.dimension_semantics<parallel>], iteration_bounds = array<i64: 2>, scalar_prefetch = 0 : i64, scratch_operands = 0 : i64, tpu.core_type = #tpu.core_type<tc>, window_params = [{transform_indices = @transform_0, window_bounds = array<i64: 64, 32>}, {pipeline_mode = #tpu.pipeline_mode<synchronous>, transform_indices = @transform_1, window_bounds = array<i64: 32, 128>}, {pipeline_mode = #tpu.pipeline_mode<synchronous>, transform_indices = @transform_2, window_bounds = array<i64: 1, 128>}, {pipeline_mode = #tpu.pipeline_mode<synchronous>, transform_indices = @transform_3, window_bounds = array<i64: 128, 128>}, {pipeline_mode = #tpu.pipeline_mode<synchronous>, transform_indices = @transform_4, window_bounds = array<i64: 1, 128>}, {transform_indices = @transform_5, window_bounds = array<i64: 64, 128>}]} {
    %c0 = arith.constant 0 : index
    %c0_0 = arith.constant 0 : index
    %0 = vector.load %arg1[%c0, %c0_0] : memref<64x32xf32, #tpu.memory_space<vmem>>, vector<64x32xf32>
    %c0_1 = arith.constant 0 : index
    %c0_2 = arith.constant 0 : index
    %1 = vector.load %arg2[%c0_1, %c0_2] : memref<32x128xf32, #tpu.memory_space<vmem>>, vector<32x128xf32>
    %cst = arith.constant dense<0.000000e+00> : vector<64x128xf32>
    %2 = tpu.matmul %0, %1, %cst {dimension_numbers = #tpu.dot_dimension_numbers<[1], [0], [0], [1], [0, 0, 1, 1], [], []>} : vector<64x32xf32>, vector<32x128xf32>, vector<64x128xf32> -> vector<64x128xf32>
    %c0_3 = arith.constant 0 : index
    %c0_4 = arith.constant 0 : index
    %3 = vector.load %arg3[%c0_3, %c0_4] : memref<1x128xf32, #tpu.memory_space<vmem>>, vector<1x128xf32>
    %4 = vector.broadcast %3 : vector<1x128xf32> to vector<64x128xf32>
    %5 = arith.addf %2, %4 : vector<64x128xf32>
    %cst_5 = arith.constant 0.000000e+00 : f32
    %6 = vector.broadcast %cst_5 : f32 to vector<64x128xf32>
    %7 = arith.maximumf %5, %6 : vector<64x128xf32>
    %c0_6 = arith.constant 0 : index
    %c0_7 = arith.constant 0 : index
    %8 = vector.load %arg4[%c0_6, %c0_7] : memref<128x128xf32, #tpu.memory_space<vmem>>, vector<128x128xf32>
    %cst_8 = arith.constant dense<0.000000e+00> : vector<64x128xf32>
    %9 = tpu.matmul %7, %8, %cst_8 {dimension_numbers = #tpu.dot_dimension_numbers<[1], [0], [0], [1], [0, 0, 1, 1], [], []>} : vector<64x128xf32>, vector<128x128xf32>, vector<64x128xf32> -> vector<64x128xf32>
    %c0_9 = arith.constant 0 : index
    %c0_10 = arith.constant 0 : index
    %10 = vector.load %arg5[%c0_9, %c0_10] : memref<1x128xf32, #tpu.memory_space<vmem>>, vector<1x128xf32>
    %11 = vector.broadcast %10 : vector<1x128xf32> to vector<64x128xf32>
    %12 = arith.addf %9, %11 : vector<64x128xf32>
    %c0_11 = arith.constant 0 : index
    %c0_12 = arith.constant 0 : index
    %13 = vector.load %arg6[%c0_11, %c0_12] : memref<64x128xf32, #tpu.memory_space<vmem>>, vector<64x128xf32>
    tpu.vector_store %arg6[%c0_11, %c0_12], %12 {strides = array<i32>} : memref<64x128xf32, #tpu.memory_space<vmem>>, vector<64x128xf32>,
    return
  }
  func.func @transform_0(%arg0: i32) -> (i32, i32) {
    %c0_i32 = arith.constant 0 : i32
    %c0_i32_0 = arith.constant 0 : i32
    return %arg0, %c0_i32 : i32, i32
  }
  func.func @transform_1(%arg0: i32) -> (i32, i32) {
    %c0_i32 = arith.constant 0 : i32
    %c0_i32_0 = arith.constant 0 : i32
    %c0_i32_1 = arith.constant 0 : i32
    return %c0_i32, %c0_i32_0 : i32, i32
  }
  func.func @transform_2(%arg0: i32) -> (i32, i32) {
    %c0_i32 = arith.constant 0 : i32
    %c0_i32_0 = arith.constant 0 : i32
    %c0_i32_1 = arith.constant 0 : i32
    return %c0_i32, %c0_i32_0 : i32, i32
  }
  func.func @transform_3(%arg0: i32) -> (i32, i32) {
    %c0_i32 = arith.constant 0 : i32
    %c0_i32_0 = arith.constant 0 : i32
    %c0_i32_1 = arith.constant 0 : i32
    return %c0_i32, %c0_i32_0 : i32, i32
  }
  func.func @transform_4(%arg0: i32) -> (i32, i32) {
    %c0_i32 = arith.constant 0 : i32
    %c0_i32_0 = arith.constant 0 : i32
    %c0_i32_1 = arith.constant 0 : i32
    return %c0_i32, %c0_i32_0 : i32, i32
  }
  func.func @transform_5(%arg0: i32) -> (i32, i32) {
    %c0_i32 = arith.constant 0 : i32
    %c0_i32_0 = arith.constant 0 : i32
    return %arg0, %c0_i32 : i32, i32
  }
}

</mosaic_0001>

<bundles_post_ra>
// kernel: tpu_custom_call.1
= control target key start
LH: loop header
LB: loop body
LE: loop exit
PB: predicated region body
PF: predicated region fallthrough
CT: control target
= control target key end

     0   :  { %10 = vsyncpa [#allocation3], 0  ;;  %s1102_s0 = inlined_call_operand.vmem [shape: f32[128,32], index: 0, kind: input, shape index: {}]   ;;  %s1103_s1 = inlined_call_operand.vmem [shape: f32[32,128], index: 1, kind: input, shape index: {}]   ;;  %s1104_s2 = inlined_call_operand.vmem [shape: f32[1,128], index: 2, kind: input, shape index: {}]   ;;  %s1105_s3 = inlined_call_operand.vmem [shape: f32[128,128], index: 3, kind: input, shape index: {}]   ;;  %s1106_s4 = inlined_call_operand.vmem [shape: f32[1,128], index: 4, kind: input, shape index: {}]   ;;  %s1107_s5 = inlined_call_operand.hbm [shape: f32[128,128], index: 5, kind: output, shape index: {}]  }
   0x1   :  { %12 = vsyncpa [#allocation3 + $0x1], 0  ;;  %s912_s18 = smov 0   ;;  %s914_s19 = smov 0  }
   0x2   :  { %s916_s20 = smov 0   ;;  %s918_s21 = smov 0  }
   0x3 LB: > { %s933_s22 = sadd.s32 4294967295, %s877_s21   ;;  %s595_s23 = sadd.s32 4294967294, %s877_s21   ;;  %s877_s21 = sphi %s918_s21, %s1113_s21   ;;  %s873_s20 = sphi %s916_s20, %s1112_s20   ;;  %s869_s19 = sphi %s914_s19, %s1111_s19   ;;  %s865_s18 = sphi %s912_s18, %s1110_s18  }
   0x4   : > { %s937_s24 = sadd.s32 1, %s877_s21   ;;  %s135_s25 = sadd.s32 1, %s873_s20 }
   0x5   : > { %s132_s26 = ssub.s32 %s877_s21, %s937_s24  ;;  %p145_p0 = scmp.ne.s32.totalorder %s873_s20, %s869_s19 }
   0x6   : > { %p133_p1 = scmp.eq.s32.totalorder %s132_s26, 0  ;;  %p146_p2 = scmp.eq.s32.totalorder %s933_s22, 1 }
   0x7   : > { %p151_p3 = scmp.ne.s32.totalorder %s869_s19, %s865_s18  ;;  %p152_p4 = scmp.eq.s32.totalorder %s595_s23, 1 }
   0x8   : > { %s948_s27 = scalar_select %p133_p1, %s873_s20, %s135_s25  }
   0x9   : > { %p950_p5 = por %p146_p2, %p145_p0  ;;  %p954_p6 = por %p152_p4, %p151_p3 }
   0xa   : > { %p598_p7 = scmp.ge.s32.totalorder %s877_s21, 1  ;;  %p191_p8 = scmp.lt.s32.totalorder %s877_s21, 3 }
   0xc   : > { %p192_p9 = pnand %p598_p7, %p191_p8 }
   0xd   : > { %v234_v0 = vld [vmem:[%s1103_s1] sm:$0xff] (!%p192_p9)  ;;  %v235_v1 = vld [vmem:[%s1103_s1 + $0x8] sm:$0xff] (!%p192_p9)  ;;  %v236_v2 = vld [vmem:[%s1103_s1 + $0x10] sm:$0xff] (!%p192_p9)  ;;  %s600_s11 = sshll.u32 (!%p192_p9), %s933_s22, 3  ;;  %vm245_vm0 = vcmask (!%p192_p9), 261120   ;;  %s216_s26 = sand.u32 (!%p192_p9), 1, %s869_s19  }
   0xe   : > { %195 = sbr.rel (%p192_p9) target bundleno = 486 (0x1e6), region = 40  ;;  %v718_v3 = vpack.c.bf16 (!%p192_p9), %v235_v1, %v234_v0  ;;  %v237_v4 = vld [vmem:[%s1103_s1 + $0x18] sm:$0xff] (!%p192_p9)  ;;  %p220_p10 = scmp.lt.s32.totalorder (!%p192_p9), %s600_s11, 15  ;;  %v383_v5 = vld [vmem:[%s1105_s3] sm:$0xff] (!%p192_p9)  ;;  %v384_v6 = vld [vmem:[%s1105_s3 + $0x8] sm:$0xff] (!%p192_p9) }
   0xf   : > { %v722_v7 = vpack.c.bf16 (!%p192_p9), %v237_v4, %v236_v2  ;;  %v726_v8 = vpack.c.bf16 (!%p192_p9), %v384_v6, %v383_v5  ;;  %v385_v9 = vld [vmem:[%s1105_s3 + $0x10] sm:$0xff] (!%p192_p9)  ;;  %v386_v10 = vld [vmem:[%s1105_s3 + $0x18] sm:$0xff] (!%p192_p9)  ;;  %v387_v12 = vld [vmem:[%s1105_s3 + $0x20] sm:$0xff] (!%p192_p9)  ;;  %s599_s30 = sshll.u32 (!%p192_p9), %s216_s26, 6  ;;  %s617_s9 = sshll.u32 (!%p192_p9), %s933_s22, 10 }
  0x10   : > { %719 = vmatprep.subr.bf16.mxu0 (!%p192_p9), %v718_v3  ;;  %v730_v11 = vpack.c.bf16 (!%p192_p9), %v386_v10, %v385_v9  ;;  %v388_v13 = vld [vmem:[%s1105_s3 + $0x28] sm:$0xff] (!%p192_p9)  ;;  %v389_v18 = vld [vmem:[%s1105_s3 + $0x30] sm:$0xff] (!%p192_p9)  ;;  %v390_v19 = vld [vmem:[%s1105_s3 + $0x38] sm:$0xff] (!%p192_p9)  ;;  %s218_s8 = scalar_lea.vmem (!%p192_p9), [#allocation2], %s599_s30  ;;  %s1061_s22 = scalar_lea.sflag (!%p192_p9), [#allocation3], %s216_s26 }
  0x11   : > { %721 = vmatpush3.bf16.msra.mxu0 (!%p192_p9), %v718_v3  ;;  %758 = vmatprep.subr.bf16.mxu1 (!%p192_p9), %v726_v8  ;;  %v734_v16 = vpack.c.bf16 (!%p192_p9), %v388_v13, %v387_v12  ;;  %v738_v21 = vpack.c.bf16 (!%p192_p9), %v390_v19, %v389_v18  ;;  %v391_v23 = vld [vmem:[%s1105_s3 + $0x40] sm:$0xff] (!%p192_p9)  ;;  %v392_v24 = vld [vmem:[%s1105_s3 + $0x48] sm:$0xff] (!%p192_p9)  ;;  %v393_v28 = vld [vmem:[%s1105_s3 + $0x50] sm:$0xff] (!%p192_p9)  ;;  %s533_s10 = sshll.u32 (!%p192_p9), %s218_s8, 4  ;;  %s879_s15 = smov (!%p192_p9), [#allocation2]   ;;  %s1057_s10 = int_to_ptr.vmem [resolvable:$true] %s533_s10 }
  0x12   : > { %723 = vmatprep.subr.bf16.mxu0 (!%p192_p9), %v722_v7  ;;  %766 = vmatpush3.bf16.msra.mxu1 (!%p192_p9), %v726_v8  ;;  %v742_v26 = vpack.c.bf16 (!%p192_p9), %v392_v24, %v391_v23  ;;  %v394_v29 = vld [vmem:[%s1105_s3 + $0x58] sm:$0xff] (!%p192_p9)  ;;  %v395_v32 = vld [vmem:[%s1105_s3 + $0x60] sm:$0xff] (!%p192_p9)  ;;  %v396_v33 = vld [vmem:[%s1105_s3 + $0x68] sm:$0xff] (!%p192_p9)  ;;  %s819_s16 = sshll.u32 (!%p192_p9), %s879_s15, 4  ;;  %s820_s16 = int_to_ptr.vmem [resolvable:$false] %s819_s16 }
  0x13   : > { %759 = vmatprep.subr.bf16.mxu1 (!%p192_p9), %v730_v11  ;;  %v746_v31 = vpack.c.bf16 (!%p192_p9), %v394_v29, %v393_v28  ;;  %v750_v34 = vpack.c.bf16 (!%p192_p9), %v396_v33, %v395_v32  ;;  %v397_v35 = vld [vmem:[%s1105_s3 + $0x70] sm:$0xff] (!%p192_p9)  ;;  %v398_v36 = vld [vmem:[%s1105_s3 + $0x78] sm:$0xff] (!%p192_p9)  ;;  %v602_v38 = vld [vmem:[%s1104_s2] ss:$0 sm:$0xff] (!%p192_p9)  ;;  %s821_s17 = scalar_lea.vmem (!%p192_p9), %s820_s16, 2048  ;;  %p822_p0 = scmp.lt.s32.totalorder (!%p192_p9), %s1057_s10, %s820_s16 }
  0x14   : > { %v754_v37 = vpack.c.bf16 (!%p192_p9), %v398_v36, %v397_v35  ;;  %v611_v63 = vld [vmem:[%s1106_s4] ss:$0 sm:$0xff] (!%p192_p9) }
  0x15   : > { %s1115_s11 = smov (!%p220_p10, %s600_s11), 15  ;;  %725 = vmatpush3.bf16.msra.mxu0 %v722_v7 }
  0x16   : > { %s601_s6 = sshll.u32 %s1115_s11, 3  ;;  %727 = vmatprep.subr.bf16.mxu0 %v726_v8  ;;  %767 = vmatpush3.bf16.msra.mxu1 %v730_v11  ;;  %s1055_s11 = scalar_lea.hbm %s1107_s5, %s617_s9 }
  0x17   : > { %s994_s14 = scalar_lea.vmem %s1102_s0, %s601_s6  ;;  %760 = vmatprep.subr.bf16.mxu1 %v734_v16 }
  0x18   : > { %v226_v14 = vld [vmem:[%s994_s14] sm:$0xff]  ;;  %v227_v15 = vld [vmem:[%s994_s14 + $0x8] sm:$0xff]  ;;  %v228_v17 = vld [vmem:[%s994_s14 + $0x10] sm:$0xff] }
  0x19   : > { %662 = vmatprep.mubr.msk.f32.mxu0 %vm245_vm0, %v226_v14  ;;  %v229_v20 = vld [vmem:[%s994_s14 + $0x18] sm:$0xff]  ;;  %v230_v22 = vld [vmem:[%s994_s14 + $0x20] sm:$0xff]  ;;  %v231_v25 = vld [vmem:[%s994_s14 + $0x28] sm:$0xff] }
  0x1a   : > { %663 = vmatmul.mubr.msk.f32.vlgmr.msra.gmra.mrb[0].mxu0 %vm245_vm0, %v227_v15  ;;  %768 = vmatpush3.bf16.msra.mxu1 %v734_v16  ;;  %v232_v27 = vld [vmem:[%s994_s14 + $0x30] sm:$0xff]  ;;  %v233_v30 = vld [vmem:[%s994_s14 + $0x38] sm:$0xff]  ;;  %s815_s14 = scalar_lea.vmem %s1057_s10, 1024 }
  0x1b   : > { %665 = vmatprep.mubr.msk.f32.mxu0 %vm245_vm0, %v228_v17  ;;  %729 = vmatpush3.bf16.msra.mxu0 %v726_v8  ;;  %p816_p11 = scmp.ne.s32.totalorder %s1057_s10, %s815_s14  ;;  %p823_p1 = scmp.lt.s32.totalorder %s821_s17, %s815_s14 }
  0x1c   : > { %731 = vmatprep.subr.bf16.mxu0 %v730_v11  ;;  %761 = vmatprep.subr.bf16.mxu1 %v738_v21 }
  0x1d   : > { %p817_p12 = pnand %p816_p11, %p950_p5  ;;  %p824_p2 = por %p823_p1, %p822_p0 }
  0x1e   : > { %666 = vmatmul.mubr.msk.f32.gmra.mrb[2].mxu0 %vm245_vm0, %v229_v20  ;;  %769 = vmatpush3.bf16.msra.mxu1 %v738_v21 }
  0x1f   : > { %668 = vmatprep.mubr.msk.f32.mxu0 %vm245_vm0, %v230_v22  ;;  %733 = vmatpush3.bf16.msra.mxu0 %v730_v11  ;;  %p818_p13 = pneg %p817_p12 }
  0x20   : > { %735 = vmatprep.subr.bf16.mxu0 %v734_v16  ;;  %762 = vmatprep.subr.bf16.mxu1 %v742_v26 }
  0x21   : > { %p825_p3 = pnand %p824_p2, %p818_p13 }
  0x22   : > { %669 = vmatmul.mubr.msk.f32.gmra.mrb[4].mxu0 %vm245_vm0, %v231_v25  ;;  %770 = vmatpush3.bf16.msra.mxu1 %v742_v26 }
  0x23   : > { %671 = vmatprep.mubr.msk.f32.mxu0 %vm245_vm0, %v232_v27  ;;  %737 = vmatpush3.bf16.msra.mxu0 %v734_v16 }
  0x24   : > { %739 = vmatprep.subr.bf16.mxu0 %v738_v21  ;;  %763 = vmatprep.subr.bf16.mxu1 %v746_v31 }
  0x26   : > { %672 = vmatmul.mubr.msk.f32.gmra.mrb[6].mxu0 %vm245_vm0, %v233_v30  ;;  %771 = vmatpush3.bf16.msra.mxu1 %v746_v31 }
  0x27   : > { %741 = vmatpush3.bf16.msra.mxu0 %v738_v21  ;;  %764 = vmatprep.subr.bf16.mxu1 %v750_v34 }
  0x28   : > { %743 = vmatprep.subr.bf16.mxu0 %v742_v26 }
  0x2a   : > { %772 = vmatpush3.bf16.msra.mxu1 %v750_v34 }
  0x2b   : > { %745 = vmatpush3.bf16.msra.mxu0 %v742_v26  ;;  %765 = vmatprep.subr.bf16.mxu1 %v754_v37 }
  0x2c   : > { %747 = vmatprep.subr.bf16.mxu0 %v746_v31 }
  0x2e   : > { %773 = vmatpush3.bf16.msra.mxu1 %v754_v37 }
  0x2f   : > { %749 = vmatpush3.bf16.msra.mxu0 %v746_v31 }
  0x30   : > { %751 = vmatprep.subr.bf16.mxu0 %v750_v34 }
  0x33   : > { %753 = vmatpush3.bf16.msra.mxu0 %v750_v34 }
  0x34   : > { %755 = vmatprep.subr.bf16.mxu0 %v754_v37 }
  0x37   : > { %757 = vmatpush3.bf16.msra.mxu0 %v754_v37 }
  0xed   : > { %v664_v39 = vpop.f32.mrb[0].mxu0 }
  0xee   : > { %v342_v40 = vadd.f32 %v664_v39, %v602_v38  ;;  %v336_v41 = vpop.f32.mrb[1].mxu0 }
  0xef   : > { %v337_v42 = vadd.f32 %v602_v38, %v336_v41 }
  0xf0   : > { %v376_v45 = vmax.f32 %v342_v40, 0.0 }
  0xf1   : > { %v375_v43 = vmax.f32 %v337_v42, 0.0  ;;  %v667_v44 = vpop.f32.mrb[2].mxu0 }
  0xf2   : > { %v352_v46 = vadd.f32 %v667_v44, %v602_v38  ;;  %v346_v47 = vpop.f32.mrb[3].mxu0 }
  0xf3   : > { %706 = vmatprep.mubr.f32.mxu0 %v375_v43  ;;  %v347_v48 = vadd.f32 %v602_v38, %v346_v47 }
  0xf4   : > { %707 = vmatmul.mubr.f32.vlgmr.msra.gmra.mrb[8].mxu0 %v376_v45  ;;  %v378_v51 = vmax.f32 %v352_v46, 0.0 }
  0xf5   : > { %v670_v49 = vpop.f32.mrb[4].mxu0  ;;  %v377_v50 = vmax.f32 %v347_v48, 0.0 }
  0xf6   : > { %v362_v52 = vadd.f32 %v670_v49, %v602_v38  ;;  %v356_v53 = vpop.f32.mrb[5].mxu0 }
  0xf7   : > { %v357_v54 = vadd.f32 %v602_v38, %v356_v53  ;;  %709 = vmatprep.mubr.f32.mxu1 %v377_v50 }
  0xf8   : > { %710 = vmatmul.mubr.f32.vlgmr.msra.gmra.mrb[0].mxu1 %v378_v51  ;;  %v380_v57 = vmax.f32 %v362_v52, 0.0 }
  0xf9   : > { %v379_v55 = vmax.f32 %v357_v54, 0.0  ;;  %v673_v56 = vpop.f32.mrb[6].mxu0 }
  0xfa   : > { %v372_v58 = vadd.f32 %v673_v56, %v602_v38  ;;  %v366_v59 = vpop.f32.mrb[7].mxu0 }
  0xfb   : > { %v367_v60 = vadd.f32 %v602_v38, %v366_v59  ;;  %712 = vmatprep.mubr.f32.mxu1 %v379_v55 }
  0xfc   : > { %713 = vmatmul.mubr.f32.gmra.mrb[2].mxu1 %v380_v57  ;;  %v382_v62 = vmax.f32 %v372_v58, 0.0 }
  0xfd   : > { %v381_v61 = vmax.f32 %v367_v60, 0.0 }
  0xff   : > { %715 = vmatprep.mubr.f32.mxu1 %v381_v61 }
 0x100   : > { %716 = vmatmul.mubr.f32.gmra.mrb[4].mxu1 %v382_v62 }
 0x1c7   : > { %v708_v0 = vpop.f32.mrb[8].mxu0 }
 0x1c8   : > { %v478_v1 = vadd.f32 %v708_v0, %v611_v63  ;;  %v472_v2 = vpop.f32.mrb[9].mxu0 }
 0x1c9   : > { %v473_v3 = vadd.f32 %v611_v63, %v472_v2 }
 0x1ca   : > { %512 = vst [vmem:[%s218_s8 + $0x8] sm:$0xff] %v478_v1 }
 0x1cb   : > { %511 = vst [vmem:[%s218_s8] sm:$0xff] %v473_v3  ;;  %v711_v4 = vpop.f32.mrb[0].mxu1 }
 0x1cc   : > { %v488_v5 = vadd.f32 %v711_v4, %v611_v63  ;;  %v482_v6 = vpop.f32.mrb[1].mxu1 }
 0x1cd   : > { %v483_v7 = vadd.f32 %v611_v63, %v482_v6 }
 0x1ce   : > { %514 = vst [vmem:[%s218_s8 + $0x18] sm:$0xff] %v488_v5 }
 0x1cf   : > { %513 = vst [vmem:[%s218_s8 + $0x10] sm:$0xff] %v483_v7  ;;  %v714_v8 = vpop.f32.mrb[2].mxu1 }
 0x1d0   : > { %v498_v9 = vadd.f32 %v714_v8, %v611_v63  ;;  %v492_v10 = vpop.f32.mrb[3].mxu1 }
 0x1d1   : > { %v493_v11 = vadd.f32 %v611_v63, %v492_v10 }
 0x1d2   : > { %516 = vst [vmem:[%s218_s8 + $0x28] sm:$0xff] %v498_v9 }
 0x1d3   : > { %515 = vst [vmem:[%s218_s8 + $0x20] sm:$0xff] %v493_v11  ;;  %v717_v12 = vpop.f32.mrb[4].mxu1 }
 0x1d4   : > { %v508_v13 = vadd.f32 %v717_v12, %v611_v63  ;;  %v502_v14 = vpop.f32.mrb[5].mxu1 }
 0x1d5   : > { %v503_v15 = vadd.f32 %v611_v63, %v502_v14 }
 0x1d6   : > { %518 = vst [vmem:[%s218_s8 + $0x38] sm:$0xff] %v508_v13 }
 0x1d7   : > { %517 = vst [vmem:[%s218_s8 + $0x30] sm:$0xff] %v503_v15 }
 0x1d8   : > { %828 = shalt.err (!%p825_p3)
}
 0x1d9   : > { %s829_s23 = scalar_lea.hbm %s1055_s11, 1024  ;;  %s833_s30 = scalar_lea.hbm %s1107_s5, 2048 }
 0x1da   : > { %p830_p4 = scmp.ne.s32.totalorder %s1055_s11, %s829_s23  ;;  %p834_p9 = scmp.lt.u32.totalorder %s1055_s11, %s1107_s5 }
 0x1db   : > { %p835_p10 = scmp.lt.u32.totalorder %s833_s30, %s829_s23  ;;  %p837_p12 = scmp.lt.u32.totalorder %s829_s23, %s1055_s11 }
 0x1dc   : > { %p831_p7 = pnand %p830_p4, %p950_p5 }
 0x1dd   : > { %p836_p11 = por %p835_p10, %p834_p9 }
 0x1de   : > { %p832_p8 = pneg %p831_p7 }
 0x1df   : > { %p838_p13 = por %p837_p12, %p836_p11 }
 0x1e1   : > { %p839_p0 = pnand %p838_p13, %p832_p8 }
 0x1e3   : > { %842 = shalt.err (!%p839_p0)
}
 0x1e4   : > { %s880_s8 = smov 128   ;;  %s881_s9 = smov 8  }
 0x1e5   : > { %774 = dma.vmem_to_hbm [thread:$0]  (%p950_p5), %s1057_s10, 1024, %s1055_s11, %s1061_s22, %s880_s8, %s880_s8, %s881_s9  }
 0x1e6 PF: > { %p780_p1 = scmp.ge.s32.totalorder %s877_s21, 2  ;;  %s548_s12 = sand.u32 1, %s865_s18  }
 0x1e7   : > { %s549_s13 = scalar_lea.sflag [#allocation3], %s548_s12 }
 0x1e8   : > { %p777_p2 = pnand %p780_p1, %p954_p6 }
 0x1ea   : > { %860 = dma.done.wait (!%p777_p2), %s549_s13, 1024  }
 0x1eb   : > { %862 = vsyncadd (!%p777_p2), %s549_s13, 4294966272  ;;  %p15_p3 = scmp.ge.s32.totalorder %s937_s24, 4   ;;  %s1110_s18 = smov %s869_s19 }
 0x1ec   : > { %s1111_s19 = smov %s873_s20  ;;  %s1112_s20 = smov %s948_s27 }
 0x1ed   : > { %s1113_s21 = smov %s937_s24  ;;  %17 = sbr.rel (!%p15_p3) target bundleno = 3 (0x3), region = 75 }
 0x1f4   :  { %554 = vsyncpa [#allocation3], 1 }
 0x1f5   :  { %556 = vsyncpa [#allocation3 + $0x1], 1 }

</bundles_post_ra>
